<compile_context>
chip_gen: v6e
topology: v6e:2x2x1
jax: 0.10.0
libtpu: 0.0.40
codegen_flags: <defaults>
</compile_context>

<pallas_src>
import functools

import jax
import jax.numpy as jnp
from jax.experimental import pallas as pl
from jax.experimental.pallas import tpu as pltpu

_LANE = 128
_SUBLANE = 8


def _round_up(n, m):
    return ((n + m - 1) // m) * m


def _make_mlp_kernel(num_layers: int, out_dim: int, compute_dtype):
    """Fused MLP kernel: num_layers Linear layers with ReLU in between."""

    def kernel(*refs):
        # refs = (x_ref, W0, b0, W1, b1, ..., W_{L-1}, b_{L-1}, out_ref)
        x_ref = refs[0]
        out_ref = refs[-1]
        param_refs = refs[1:-1]

        h = x_ref[...]  # compute dtype (bf16 feeds the MXU natively, f32 stays f32)
        for i in range(num_layers):
            w = param_refs[2 * i][...]
            b = param_refs[2 * i + 1][...].astype(jnp.float32)
            acc = jnp.dot(h, w, preferred_element_type=jnp.float32) + b
            if i < num_layers - 1:
                acc = jnp.maximum(acc, 0.0)  # ReLU (activation_function='RELU')
                h = acc.astype(compute_dtype)
            else:
                h = acc
        # TODO(synk): dropout layers omitted (default dropout_layers=[]; eval-mode
        # dropout is identity anyway).
        # Narrow store: only the real output columns (out_dim=2) go back to HBM.
        out_ref[...] = h[:, :out_dim].astype(out_ref.dtype)

    return kernel


def prepare_params(params, compute_dtype=jnp.float32):
    """One-time padding of weights/biases to 128-lane-wide tiles.

    params: tuple of (W, b); W is (in_features, out_features), b is (out_features,)
    Returns (flat tuple [W0, b0, W1, b1, ...] of padded arrays, out_dim).
    Padding rows/cols are exact zeros, so results match the unpadded MLP.
    Call this ONCE and reuse the result (keeps pad cost out of the hot path).
    """
    padded = []
    prev_pad = params[0][0].shape[0]  # input_size stays unpadded
    for (w, b) in params:
        in_f, out_f = w.shape
        out_pad = _round_up(out_f, _LANE)
        wp = jnp.zeros((prev_pad, out_pad), compute_dtype)
        wp = wp.at[:in_f, :out_f].set(w.astype(compute_dtype))
        bp = jnp.zeros((1, out_pad), jnp.float32)
        bp = bp.at[0, :out_f].set(b.reshape(-1).astype(jnp.float32))
        padded += [wp, bp]
        prev_pad = out_pad
    out_dim = params[-1][0].shape[1]
    return tuple(padded), out_dim


@functools.partial(jax.jit, static_argnames=("out_dim", "tile_m"))
def mlp_forward(x, padded_params, out_dim=2, tile_m=2048):
    """Forward pass.

    x:             (batch, input_size)
    padded_params: flat tuple from prepare_params()
    """
    batch, in_dim = x.shape
    num_layers = len(padded_params) // 2
    compute_dtype = padded_params[0].dtype
    x = x.astype(compute_dtype)

    # --- Tile the batch dimension. ---
    # Aim for >= 2 grid steps whenever the batch allows it (v7x = 2 TensorCores;
    # costs only one extra ~0.35us step on v5e/v6e), capped at tile_m.
    half = _round_up(-(-batch // 2), _SUBLANE)
    tm = max(_SUBLANE, min(tile_m, half))
    padded_batch = _round_up(batch, tm)
    if padded_batch != batch:
        x = jnp.pad(x, ((0, padded_batch - batch), (0, 0)))
    grid = (padded_batch // tm,)

    # x / out tiled over batch; weights & biases resident (constant block index).
    x_spec = pl.BlockSpec((tm, in_dim), lambda i: (i, 0))
    out_spec = pl.BlockSpec((tm, out_dim), lambda i: (i, 0))
    param_specs = [pl.BlockSpec(p.shape, lambda i: (0, 0)) for p in padded_params]

    # Advisory cost estimate so XLA schedules around the custom call sensibly.
    flops = 2 * padded_batch * sum(
        padded_params[2 * j].shape[0] * padded_params[2 * j].shape[1]
        for j in range(num_layers)
    )
    bytes_accessed = (
        padded_batch * in_dim * x.dtype.itemsize
        + sum(p.size * p.dtype.itemsize for p in padded_params)
        + padded_batch * out_dim * x.dtype.itemsize
    )
    cost = pl.CostEstimate(flops=flops, transcendentals=0,
                           bytes_accessed=bytes_accessed)

    out = pl.pallas_call(
        _make_mlp_kernel(num_layers, out_dim, compute_dtype),
        out_shape=jax.ShapeDtypeStruct((padded_batch, out_dim), x.dtype),
        grid=grid,
        in_specs=[x_spec] + param_specs,
        out_specs=out_spec,
        compiler_params=pltpu.CompilerParams(
            dimension_semantics=("parallel",),
        ),
        cost_estimate=cost,
    )(x, *padded_params)

    if padded_batch != batch:
        out = out[:batch]
    return out


def init_params(key, input_size, hidden_layers, output_size=2, dtype=jnp.float32):
    """Deterministic synthetic parameters (uniform, like nn.Linear defaults)."""
    sizes = [input_size] + list(hidden_layers) + [output_size]
    params = []
    for in_f, out_f in zip(sizes[:-1], sizes[1:]):
        key, kw, kb = jax.random.split(key, 3)
        bound = 1.0 / jnp.sqrt(in_f)
        w = jax.random.uniform(kw, (in_f, out_f), dtype, -bound, bound)
        b = jax.random.uniform(kb, (out_f,), dtype, -bound, bound)
        params.append((w, b))
    return tuple(params)


def reference_forward(x, params):
    """Pure-JAX reference of the same MLP for a sanity check."""
    num_layers = len(params)
    h = x.astype(jnp.float32)
    for i, (w, b) in enumerate(params):
        h = h @ w.astype(jnp.float32) + b.astype(jnp.float32)
        if i < num_layers - 1:
            h = jnp.maximum(h, 0.0)
    return h.astype(x.dtype)


if __name__ == "__main__":
    key = jax.random.PRNGKey(0)

    input_size = 32
    hidden_layers = [64, 32]  # EnergyFitnessFindingFromPLMEmbeddings(32, [64, 32])

    key, kparams = jax.random.split(key)
    params = init_params(kparams, input_size, hidden_layers)
    padded_params, out_dim = prepare_params(params)  # padded once, reused

    # --- Test 1: small batch (single grid step). ---
    key, kx = jax.random.split(key)
    x_small = jax.random.normal(kx, (8, input_size), jnp.float32)
    out_small = jax.block_until_ready(mlp_forward(x_small, padded_params,
                                                  out_dim=out_dim))
    ref_small = reference_forward(x_small, params)
    assert out_small.shape == (8, 2), out_small.shape
    assert jnp.allclose(out_small, ref_small, atol=1e-5, rtol=1e-5), \
        "mismatch vs reference (small batch)"

    # --- Test 2: batch not a multiple of the tile, multiple grid steps. ---
    key, kx2 = jax.random.split(key)
    x_big = jax.random.normal(kx2, (200, input_size), jnp.float32)
    out_big = jax.block_until_ready(mlp_forward(x_big, padded_params,
                                                out_dim=out_dim, tile_m=64))
    ref_big = reference_forward(x_big, params)
    assert out_big.shape == (200, 2), out_big.shape
    assert jnp.allclose(out_big, ref_big, atol=1e-5, rtol=1e-5), \
        "mismatch vs reference (multi-tile batch)"

    print("KERNEL_OK")
</pallas_src>

<mosaic_0001>
module attributes {stable_mosaic.version = 11 : i64} {
  func.func @kernel(%arg0: i32, %arg1: memref<8x32xf32, #tpu.memory_space<vmem>>, %arg2: memref<32x128xf32, #tpu.memory_space<vmem>>, %arg3: memref<1x128xf32, #tpu.memory_space<vmem>>, %arg4: memref<128x128xf32, #tpu.memory_space<vmem>>, %arg5: memref<1x128xf32, #tpu.memory_space<vmem>>, %arg6: memref<128x128xf32, #tpu.memory_space<vmem>>, %arg7: memref<1x128xf32, #tpu.memory_space<vmem>>, %arg8: memref<8x2xf32, #tpu.memory_space<vmem>>) attributes {dimension_semantics = [#tpu.dimension_semantics<parallel>], iteration_bounds = array<i64: 1>, scalar_prefetch = 0 : i64, scratch_operands = 0 : i64, tpu.core_type = #tpu.core_type<tc>, window_params = [{transform_indices = @transform_0, window_bounds = array<i64: 8, 32>}, {pipeline_mode = #tpu.pipeline_mode<synchronous>, transform_indices = @transform_1, window_bounds = array<i64: 32, 128>}, {pipeline_mode = #tpu.pipeline_mode<synchronous>, transform_indices = @transform_2, window_bounds = array<i64: 1, 128>}, {pipeline_mode = #tpu.pipeline_mode<synchronous>, transform_indices = @transform_3, window_bounds = array<i64: 128, 128>}, {pipeline_mode = #tpu.pipeline_mode<synchronous>, transform_indices = @transform_4, window_bounds = array<i64: 1, 128>}, {pipeline_mode = #tpu.pipeline_mode<synchronous>, transform_indices = @transform_5, window_bounds = array<i64: 128, 128>}, {pipeline_mode = #tpu.pipeline_mode<synchronous>, transform_indices = @transform_6, window_bounds = array<i64: 1, 128>}, {transform_indices = @transform_7, window_bounds = array<i64: 8, 2>}]} {
    %c0 = arith.constant 0 : index
    %c0_0 = arith.constant 0 : index
    %0 = vector.load %arg1[%c0, %c0_0] : memref<8x32xf32, #tpu.memory_space<vmem>>, vector<8x32xf32>
    %c0_1 = arith.constant 0 : index
    %c0_2 = arith.constant 0 : index
    %1 = vector.load %arg2[%c0_1, %c0_2] : memref<32x128xf32, #tpu.memory_space<vmem>>, vector<32x128xf32>
    %c0_3 = arith.constant 0 : index
    %c0_4 = arith.constant 0 : index
    %2 = vector.load %arg3[%c0_3, %c0_4] : memref<1x128xf32, #tpu.memory_space<vmem>>, vector<1x128xf32>
    %cst = arith.constant dense<0.000000e+00> : vector<8x128xf32>
    %3 = tpu.matmul %0, %1, %cst {dimension_numbers = #tpu.dot_dimension_numbers<[1], [0], [0], [1], [0, 0, 1, 1], [], []>} : vector<8x32xf32>, vector<32x128xf32>, vector<8x128xf32> -> vector<8x128xf32>
    %4 = vector.broadcast %2 : vector<1x128xf32> to vector<8x128xf32>
    %5 = arith.addf %3, %4 : vector<8x128xf32>
    %cst_5 = arith.constant 0.000000e+00 : f32
    %6 = vector.broadcast %cst_5 : f32 to vector<8x128xf32>
    %7 = arith.maximumf %5, %6 : vector<8x128xf32>
    %c0_6 = arith.constant 0 : index
    %c0_7 = arith.constant 0 : index
    %8 = vector.load %arg4[%c0_6, %c0_7] : memref<128x128xf32, #tpu.memory_space<vmem>>, vector<128x128xf32>
    %c0_8 = arith.constant 0 : index
    %c0_9 = arith.constant 0 : index
    %9 = vector.load %arg5[%c0_8, %c0_9] : memref<1x128xf32, #tpu.memory_space<vmem>>, vector<1x128xf32>
    %cst_10 = arith.constant dense<0.000000e+00> : vector<8x128xf32>
    %10 = tpu.matmul %7, %8, %cst_10 {dimension_numbers = #tpu.dot_dimension_numbers<[1], [0], [0], [1], [0, 0, 1, 1], [], []>} : vector<8x128xf32>, vector<128x128xf32>, vector<8x128xf32> -> vector<8x128xf32>
    %11 = vector.broadcast %9 : vector<1x128xf32> to vector<8x128xf32>
    %12 = arith.addf %10, %11 : vector<8x128xf32>
    %cst_11 = arith.constant 0.000000e+00 : f32
    %13 = vector.broadcast %cst_11 : f32 to vector<8x128xf32>
    %14 = arith.maximumf %12, %13 : vector<8x128xf32>
    %c0_12 = arith.constant 0 : index
    %c0_13 = arith.constant 0 : index
    %15 = vector.load %arg6[%c0_12, %c0_13] : memref<128x128xf32, #tpu.memory_space<vmem>>, vector<128x128xf32>
    %c0_14 = arith.constant 0 : index
    %c0_15 = arith.constant 0 : index
    %16 = vector.load %arg7[%c0_14, %c0_15] : memref<1x128xf32, #tpu.memory_space<vmem>>, vector<1x128xf32>
    %cst_16 = arith.constant dense<0.000000e+00> : vector<8x128xf32>
    %17 = tpu.matmul %14, %15, %cst_16 {dimension_numbers = #tpu.dot_dimension_numbers<[1], [0], [0], [1], [0, 0, 1, 1], [], []>} : vector<8x128xf32>, vector<128x128xf32>, vector<8x128xf32> -> vector<8x128xf32>
    %18 = vector.broadcast %16 : vector<1x128xf32> to vector<8x128xf32>
    %19 = arith.addf %17, %18 : vector<8x128xf32>
    %20 = vector.extract_strided_slice %19 {offsets = [0, 0], sizes = [8, 2], strides = [1, 1]} : vector<8x128xf32> to vector<8x2xf32>
    %c0_17 = arith.constant 0 : index
    %c0_18 = arith.constant 0 : index
    %21 = vector.load %arg8[%c0_17, %c0_18] : memref<8x2xf32, #tpu.memory_space<vmem>>, vector<8x2xf32>
    tpu.vector_store %arg8[%c0_17, %c0_18], %20 {strides = array<i32>} : memref<8x2xf32, #tpu.memory_space<vmem>>, vector<8x2xf32>,
    return
  }
  func.func @transform_0(%arg0: i32) -> (i32, i32) {
    %c0_i32 = arith.constant 0 : i32
    %c0_i32_0 = arith.constant 0 : i32
    return %arg0, %c0_i32 : i32, i32
  }
  func.func @transform_1(%arg0: i32) -> (i32, i32) {
    %c0_i32 = arith.constant 0 : i32
    %c0_i32_0 = arith.constant 0 : i32
    %c0_i32_1 = arith.constant 0 : i32
    return %c0_i32, %c0_i32_0 : i32, i32
  }
  func.func @transform_2(%arg0: i32) -> (i32, i32) {
    %c0_i32 = arith.constant 0 : i32
    %c0_i32_0 = arith.constant 0 : i32
    %c0_i32_1 = arith.constant 0 : i32
    return %c0_i32, %c0_i32_0 : i32, i32
  }
  func.func @transform_3(%arg0: i32) -> (i32, i32) {
    %c0_i32 = arith.constant 0 : i32
    %c0_i32_0 = arith.constant 0 : i32
    %c0_i32_1 = arith.constant 0 : i32
    return %c0_i32, %c0_i32_0 : i32, i32
  }
  func.func @transform_4(%arg0: i32) -> (i32, i32) {
    %c0_i32 = arith.constant 0 : i32
    %c0_i32_0 = arith.constant 0 : i32
    %c0_i32_1 = arith.constant 0 : i32
    return %c0_i32, %c0_i32_0 : i32, i32
  }
  func.func @transform_5(%arg0: i32) -> (i32, i32) {
    %c0_i32 = arith.constant 0 : i32
    %c0_i32_0 = arith.constant 0 : i32
    %c0_i32_1 = arith.constant 0 : i32
    return %c0_i32, %c0_i32_0 : i32, i32
  }
  func.func @transform_6(%arg0: i32) -> (i32, i32) {
    %c0_i32 = arith.constant 0 : i32
    %c0_i32_0 = arith.constant 0 : i32
    %c0_i32_1 = arith.constant 0 : i32
    return %c0_i32, %c0_i32_0 : i32, i32
  }
  func.func @transform_7(%arg0: i32) -> (i32, i32) {
    %c0_i32 = arith.constant 0 : i32
    %c0_i32_0 = arith.constant 0 : i32
    return %arg0, %c0_i32 : i32, i32
  }
}

</mosaic_0001>

<bundles_post_ra>
// kernel: mlp_forward.1
= control target key start
LH: loop header
LB: loop body
LE: loop exit
PB: predicated region body
PF: predicated region fallthrough
CT: control target
= control target key end

     0   :  { %12 = vsyncpa [#allocation3], 0  ;;  %s703_s0 = inlined_call_operand.hbm [shape: f32[8,32], index: 0, kind: input, shape index: {}]   ;;  %s704_s1 = inlined_call_operand.hbm [shape: f32[32,128], index: 1, kind: input, shape index: {}]   ;;  %s705_s2 = inlined_call_operand.vmem [shape: f32[1,128], index: 2, kind: input, shape index: {}]   ;;  %s706_s3 = inlined_call_operand.hbm [shape: f32[128,128], index: 3, kind: input, shape index: {}]   ;;  %s707_s4 = inlined_call_operand.vmem [shape: f32[1,128], index: 4, kind: input, shape index: {}]   ;;  %s708_s5 = inlined_call_operand.hbm [shape: f32[128,128], index: 5, kind: input, shape index: {}]   ;;  %s709_s6 = inlined_call_operand.vmem [shape: f32[1,128], index: 6, kind: input, shape index: {}]   ;;  %s710_s7 = inlined_call_operand.vmem [shape: f32[8,2], index: 7, kind: output, shape index: {}]  }
   0x1   :  { %13 = vsyncpa [#allocation5], 0 }
   0x2   :  { %14 = vsyncpa [#allocation8], 0  ;;  %s580_s24 = smov [#allocation4]  }
   0x3   :  { %s30_s25 = sshll.u32 %s580_s24, 4  ;;  %s31_s25 = int_to_ptr.vmem [resolvable:$true] %s30_s25 }
   0x4   :  { %s502_s26 = scalar_lea.vmem %s31_s25, 512  ;;  %p507_p1 = scmp.lt.s32.totalorder %s31_s25, %s31_s25 }
   0x5   :  { %p503_p0 = scmp.ne.s32.totalorder %s31_s25, %s502_s26  ;;  %p508_p2 = scmp.lt.s32.totalorder %s502_s26, %s502_s26 }
   0x7   :  { %p509_p3 = por %p508_p2, %p507_p1 }
   0x9   :  { %p510_p4 = pnand %p509_p3, %p503_p0 }
   0xb   :  { %513 = shalt.err (!%p510_p4)
}
   0xc   :  { %s581_s27 = smov 128   ;;  %s582_s28 = smov 8  }
   0xd   :  { %36 = dma.hbm_to_vmem [thread:$0]  %s704_s1, 512, %s31_s25, [#allocation5], %s581_s27, %s581_s27, %s582_s28  }
   0xe   :  { %s583_s8 = smov [#allocation2]   ;;  %s584_s10 = smov [#allocation6]  }
   0xf   :  { %s21_s9 = sshll.u32 %s583_s8, 4  ;;  %s44_s11 = sshll.u32 %s584_s10, 4  ;;  %s22_s9 = int_to_ptr.vmem [resolvable:$true] %s21_s9  ;;  %s45_s11 = int_to_ptr.vmem [resolvable:$true] %s44_s11 }
  0x10   :  { %s522_s12 = scalar_lea.vmem %s22_s9, 128  ;;  %p527_p6 = scmp.lt.s32.totalorder %s22_s9, %s22_s9 }
  0x11   :  { %p523_p5 = scmp.ne.s32.totalorder %s22_s9, %s522_s12  ;;  %p528_p7 = scmp.lt.s32.totalorder %s522_s12, %s522_s12 }
  0x13   :  { %p529_p8 = por %p528_p7, %p527_p6 }
  0x15   :  { %p530_p9 = pnand %p529_p8, %p523_p5 }
  0x17   :  { %533 = shalt.err (!%p530_p9)
}
  0x18   :  { %24 = dma.hbm_to_vmem [thread:$0]  %s703_s0, 128, %s22_s9, [#allocation3]  }
  0x19   :  { %s542_s15 = scalar_lea.vmem %s45_s11, 2048  ;;  %p547_p11 = scmp.lt.s32.totalorder %s45_s11, %s45_s11 }
  0x1a   :  { %p543_p10 = scmp.ne.s32.totalorder %s45_s11, %s542_s15  ;;  %p548_p12 = scmp.lt.s32.totalorder %s542_s15, %s542_s15 }
  0x1c   :  { %p549_p13 = por %p548_p12, %p547_p11 }
  0x1e   :  { %p550_p0 = pnand %p549_p13, %p543_p10 }
  0x20   :  { %553 = shalt.err (!%p550_p0)
}
  0x21   :  { %50 = dma.hbm_to_vmem [thread:$0]  %s706_s3, 2048, %s45_s11, [#allocation5], %s581_s27, %s581_s27, %s582_s28  }
  0x22   :  { %s585_s17 = smov [#allocation7]  }
  0x23   :  { %s58_s18 = sshll.u32 %s585_s17, 4  ;;  %s59_s18 = int_to_ptr.vmem [resolvable:$true] %s58_s18 }
  0x24   :  { %s562_s19 = scalar_lea.vmem %s59_s18, 2048  ;;  %p567_p2 = scmp.lt.s32.totalorder %s59_s18, %s59_s18 }
  0x25   :  { %p563_p1 = scmp.ne.s32.totalorder %s59_s18, %s562_s19  ;;  %p568_p3 = scmp.lt.s32.totalorder %s562_s19, %s562_s19 }
  0x27   :  { %p569_p4 = por %p568_p3, %p567_p2 }
  0x29   :  { %p570_p5 = pnand %p569_p4, %p563_p1 }
  0x2b   :  { %573 = shalt.err (!%p570_p5)
}
  0x2c   :  { %64 = dma.hbm_to_vmem [thread:$0]  %s708_s5, 2048, %s59_s18, [#allocation8], %s581_s27, %s581_s27, %s582_s28  }
  0x2d   :  { %574 = dma.done.wait [#allocation3], 128  }
  0x2e   :  { %575 = vsyncadd [#allocation3], 4294967168 }
  0x2f   :  { %576 = dma.done.wait [#allocation5], 2560  }
  0x30   :  { %577 = vsyncadd [#allocation5], 4294964736 }
  0x31   :  { %578 = dma.done.wait [#allocation8], 2048  }
  0x32   :  { %579 = vsyncadd [#allocation8], 4294965248  ;;  %v586_v0 = vmov 0.0   ;;  %vm587_vm0 = vmmov 0   ;;  %v83_v1 = vld [vmem:[#allocation4 + $0x18] sm:$0xff]  ;;  %v82_v2 = vld [vmem:[#allocation4 + $0x10] sm:$0xff] }
  0x33   :  { %405 = vmatprep.subr.mxu0 %v586_v0  ;;  %413 = vmatprep.mubr.msk.f32.mxu0 %vm587_vm0, %v586_v0  ;;  %v181_v3 = vld [vmem:[#allocation6 + $0x78] sm:$0xff]  ;;  %v81_v4 = vld [vmem:[#allocation4 + $0x8] sm:$0xff]  ;;  %v180_v5 = vld [vmem:[#allocation6 + $0x70] sm:$0xff]  ;;  %vm91_vm1 = vcmask 261120   ;;  %vm353_vm2 = vcmask 15360  }
  0x34   :  { %416 = vmatprep.subr.mxu1 %v586_v0  ;;  %448 = vmatprep.mubr.msk.f32.mxu1 %vm587_vm0, %v586_v0  ;;  %v179_v6 = vld [vmem:[#allocation6 + $0x68] sm:$0xff]  ;;  %v80_v7 = vld [vmem:[#allocation4] sm:$0xff]  ;;  %v79_v8 = vld [vmem:[#allocation2] sm:$0xff] }
  0x35   :  { %406 = vmatpush3.msra.mxu0 %v83_v1  ;;  %417 = vmatpush3.msra.mxu1 %v181_v3  ;;  %v178_v9 = vld [vmem:[#allocation6 + $0x60] sm:$0xff]  ;;  %v177_v10 = vld [vmem:[#allocation6 + $0x58] sm:$0xff]  ;;  %v176_v11 = vld [vmem:[#allocation6 + $0x50] sm:$0xff] }
  0x36   :  { %407 = vmatprep.subr.mxu0 %v586_v0  ;;  %418 = vmatprep.subr.mxu1 %v586_v0  ;;  %v175_v12 = vld [vmem:[#allocation6 + $0x48] sm:$0xff]  ;;  %v174_v13 = vld [vmem:[#allocation6 + $0x40] sm:$0xff]  ;;  %v173_v14 = vld [vmem:[#allocation6 + $0x38] sm:$0xff] }
  0x37   :  { %408 = vmatpush3.msra.mxu0 %v82_v2  ;;  %419 = vmatpush3.msra.mxu1 %v180_v5  ;;  %v172_v15 = vld [vmem:[#allocation6 + $0x30] sm:$0xff]  ;;  %v171_v16 = vld [vmem:[#allocation6 + $0x28] sm:$0xff]  ;;  %v170_v17 = vld [vmem:[#allocation6 + $0x20] sm:$0xff] }
  0x38   :  { %409 = vmatprep.subr.mxu0 %v586_v0  ;;  %420 = vmatprep.subr.mxu1 %v586_v0  ;;  %v169_v18 = vld [vmem:[#allocation6 + $0x18] sm:$0xff]  ;;  %v168_v19 = vld [vmem:[#allocation6 + $0x10] sm:$0xff]  ;;  %v167_v20 = vld [vmem:[#allocation6 + $0x8] sm:$0xff] }
  0x39   :  { %410 = vmatpush3.msra.mxu0 %v81_v4  ;;  %421 = vmatpush3.msra.mxu1 %v179_v6  ;;  %v166_v21 = vld [vmem:[#allocation6] sm:$0xff]  ;;  %v275_v22 = vld [vmem:[#allocation7 + $0x78] sm:$0xff]  ;;  %v274_v23 = vld [vmem:[#allocation7 + $0x70] sm:$0xff] }
  0x3a   :  { %411 = vmatprep.subr.mxu0 %v586_v0  ;;  %422 = vmatprep.subr.mxu1 %v586_v0  ;;  %v273_v24 = vld [vmem:[#allocation7 + $0x68] sm:$0xff]  ;;  %v272_v25 = vld [vmem:[#allocation7 + $0x60] sm:$0xff]  ;;  %v271_v26 = vld [vmem:[#allocation7 + $0x58] sm:$0xff] }
  0x3b   :  { %412 = vmatpush3.msra.mxu0 %v80_v7  ;;  %423 = vmatpush3.msra.mxu1 %v178_v9  ;;  %v270_v27 = vld [vmem:[#allocation7 + $0x50] sm:$0xff]  ;;  %v269_v28 = vld [vmem:[#allocation7 + $0x48] sm:$0xff]  ;;  %v268_v29 = vld [vmem:[#allocation7 + $0x40] sm:$0xff] }
  0x3c   :  { %414 = vmatmul.mubr.msk.f32.vlgmr.msra.gmra.mxu0 %vm91_vm1, %v79_v8  ;;  %424 = vmatprep.subr.mxu1 %v586_v0  ;;  %v267_v30 = vld [vmem:[#allocation7 + $0x38] sm:$0xff]  ;;  %v266_v31 = vld [vmem:[#allocation7 + $0x30] sm:$0xff]  ;;  %v265_v32 = vld [vmem:[#allocation7 + $0x28] sm:$0xff] }
  0x3d   :  { %451 = vmatprep.subr.mxu0 %v586_v0  ;;  %425 = vmatpush3.msra.mxu1 %v177_v10  ;;  %v264_v33 = vld [vmem:[#allocation7 + $0x20] sm:$0xff]  ;;  %v263_v34 = vld [vmem:[#allocation7 + $0x18] sm:$0xff]  ;;  %v262_v40 = vld [vmem:[#allocation7 + $0x10] sm:$0xff] }
  0x3e   :  { %483 = vmatprep.mubr.msk.f32.mxu0 %vm587_vm0, %v586_v0  ;;  %426 = vmatprep.subr.mxu1 %v586_v0  ;;  %v362_v35 = vld [vmem:[%s705_s2] ss:$0 sm:$0xff]  ;;  %v261_v41 = vld [vmem:[#allocation7 + $0x8] sm:$0xff]  ;;  %v260_v42 = vld [vmem:[#allocation7] sm:$0xff] }
  0x3f   :  { %427 = vmatpush3.msra.mxu1 %v176_v11  ;;  %452 = vmatpush3.msra.mxu0 %v275_v22  ;;  %v364_v43 = vld [vmem:[%s707_s4] ss:$0 sm:$0xff] }
  0x40   :  { %428 = vmatprep.subr.mxu1 %v586_v0  ;;  %453 = vmatprep.subr.mxu0 %v586_v0  ;;  %v365_v48 = vld [vmem:[%s709_s6] ss:$0 sm:$0xff] }
  0x41   :  { %429 = vmatpush3.msra.mxu1 %v175_v12  ;;  %454 = vmatpush3.msra.mxu0 %v274_v23 }
  0x42   :  { %430 = vmatprep.subr.mxu1 %v586_v0  ;;  %455 = vmatprep.subr.mxu0 %v586_v0 }
  0x43   :  { %431 = vmatpush3.msra.mxu1 %v174_v13  ;;  %456 = vmatpush3.msra.mxu0 %v273_v24 }
  0x44   :  { %432 = vmatprep.subr.mxu1 %v586_v0  ;;  %457 = vmatprep.subr.mxu0 %v586_v0 }
  0x45   :  { %433 = vmatpush3.msra.mxu1 %v173_v14  ;;  %458 = vmatpush3.msra.mxu0 %v272_v25 }
  0x46   :  { %434 = vmatprep.subr.mxu1 %v586_v0  ;;  %459 = vmatprep.subr.mxu0 %v586_v0 }
  0x47   :  { %435 = vmatpush3.msra.mxu1 %v172_v15  ;;  %460 = vmatpush3.msra.mxu0 %v271_v26 }
  0x48   :  { %436 = vmatprep.subr.mxu1 %v586_v0  ;;  %461 = vmatprep.subr.mxu0 %v586_v0 }
  0x49   :  { %437 = vmatpush3.msra.mxu1 %v171_v16  ;;  %462 = vmatpush3.msra.mxu0 %v270_v27 }
  0x4a   :  { %438 = vmatprep.subr.mxu1 %v586_v0  ;;  %463 = vmatprep.subr.mxu0 %v586_v0 }
  0x4b   :  { %439 = vmatpush3.msra.mxu1 %v170_v17  ;;  %464 = vmatpush3.msra.mxu0 %v269_v28 }
  0x4c   :  { %440 = vmatprep.subr.mxu1 %v586_v0  ;;  %465 = vmatprep.subr.mxu0 %v586_v0 }
  0x4d   :  { %441 = vmatpush3.msra.mxu1 %v169_v18  ;;  %466 = vmatpush3.msra.mxu0 %v268_v29 }
  0x4e   :  { %442 = vmatprep.subr.mxu1 %v586_v0  ;;  %467 = vmatprep.subr.mxu0 %v586_v0 }
  0x4f   :  { %443 = vmatpush3.msra.mxu1 %v168_v19  ;;  %468 = vmatpush3.msra.mxu0 %v267_v30 }
  0x50   :  { %444 = vmatprep.subr.mxu1 %v586_v0  ;;  %469 = vmatprep.subr.mxu0 %v586_v0 }
  0x51   :  { %445 = vmatpush3.msra.mxu1 %v167_v20  ;;  %470 = vmatpush3.msra.mxu0 %v266_v31 }
  0x52   :  { %446 = vmatprep.subr.mxu1 %v586_v0  ;;  %471 = vmatprep.subr.mxu0 %v586_v0 }
  0x53   :  { %447 = vmatpush3.msra.mxu1 %v166_v21  ;;  %472 = vmatpush3.msra.mxu0 %v265_v32 }
  0x54   :  { %473 = vmatprep.subr.mxu0 %v586_v0 }
  0x55   :  { %474 = vmatpush3.msra.mxu0 %v264_v33 }
  0x56   :  { %475 = vmatprep.subr.mxu0 %v586_v0 }
  0x57   :  { %476 = vmatpush3.msra.mxu0 %v263_v34 }
  0x58   :  { %477 = vmatprep.subr.mxu0 %v586_v0 }
  0x59   :  { %478 = vmatpush3.msra.mxu0 %v262_v40 }
  0x5a   :  { %479 = vmatprep.subr.mxu0 %v586_v0 }
  0x5b   :  { %480 = vmatpush3.msra.mxu0 %v261_v41 }
  0x5c   :  { %481 = vmatprep.subr.mxu0 %v586_v0 }
  0x5d   :  { %482 = vmatpush3.msra.mxu0 %v260_v42 }
  0xfc   :  { %v161_v36 = vpop.f32.mrf.mxu0 }
  0xfd   :  { %v162_v37 = vadd.f32 %v362_v35, %v161_v36 }
  0xfe   :  { %v415_v38 = vpop.f32.mrf.mxu0 }
  0xff   :  { %v165_v39 = vmax.f32 %v162_v37, 0.0 }
 0x101   :  { %449 = vmatmul.mubr.f32.vlgmr.msra.gmra.mxu1 %v165_v39 }
 0x1c1   :  { %v255_v44 = vpop.f32.mrf.mxu1 }
 0x1c2   :  { %v256_v45 = vadd.f32 %v364_v43, %v255_v44 }
 0x1c3   :  { %v450_v46 = vpop.f32.mrf.mxu1 }
 0x1c4   :  { %v259_v47 = vmax.f32 %v256_v45, 0.0 }
 0x1c6   :  { %484 = vmatmul.mubr.f32.vlgmr.msra.gmra.mxu0 %v259_v47 }
 0x286   :  { %v349_v49 = vpop.f32.mrf.mxu0 }
 0x287   :  { %v350_v50 = vadd.f32 %v365_v48, %v349_v49 }
 0x288   :  { %v485_v51 = vpop.f32.mrf.mxu0 }
 0x289   :  { %354 = vst.msk [vmem:[%s710_s7] sm:$0xff] %vm353_vm2, %v350_v50 }
 0x28a   :  { %359 = vsyncpa [#allocation3], 1 }
 0x28b   :  { %360 = vsyncpa [#allocation5], 1 }
 0x28c   :  { %361 = vsyncpa [#allocation8], 1 }

</bundles_post_ra>
